<compile_context>
chip_gen: v7x
topology: tpu7x:2x2x1
jax: 0.10.0
libtpu: 0.0.40
codegen_flags: <defaults>
</compile_context>

<pallas_src>
import numpy as np
import jax
import jax.numpy as jnp
from jax import lax
from jax.experimental import pallas as pl
from jax.experimental.pallas import tpu as pltpu

RATIO = 0.0125
EPS = 1e-12
LANE = 128
MAX_TILE = 32768  # lanes per grid step; (3+3+L)*4 B/lane -> ~1 MiB/buffer


def _round_up(x: int, m: int) -> int:
    return ((x + m - 1) // m) * m


def make_onion_kernel(ratio: float, num_layers: int):
    """Fused: ellipsoid scaling + `num_layers` offset-along-normal steps."""

    def kernel(radii_ref, sphere_ref, offsets_ref, out_ref):
        # radii_ref: (3,) f32 in SMEM -> scalar broadcasts on the scalar path.
        x = sphere_ref[0:1, :] * radii_ref[0]          # (1, T)
        y = sphere_ref[1:2, :] * radii_ref[1]
        z = sphere_ref[2:3, :] * radii_ref[2]

        # Statically unrolled small layer count.
        for l in range(num_layers):
            nrm2 = x * x + y * y + z * z               # per-lane VPU, no XLU
            inv = lax.rsqrt(nrm2 + EPS)                # EUP slot (free-ish)
            s = 1.0 + ratio * offsets_ref[l:l + 1, :] * inv
            x = x * s
            y = y * s
            z = z * s

        out_ref[0:1, :] = x
        out_ref[1:2, :] = y
        out_ref[2:3, :] = z

    return kernel


def onion_forward(sphere_xyz, radii, offsets, ratio=RATIO):
    """sphere_xyz: (3, N) unit sphere, radii: (3,), offsets: (L, N) -> (3, N)."""
    three, n = sphere_xyz.shape
    assert three == 3
    num_layers = offsets.shape[0]

    # Large lane tiles; single block when everything fits (toy N -> gridless).
    if n <= MAX_TILE:
        tile = _round_up(n, LANE)
    else:
        tile = MAX_TILE
    n_pad = _round_up(n, tile)
    if n_pad != n:
        # Zero padding: padded lanes have off=0 -> s=1 -> stay 0 (finite).
        sphere_xyz = jnp.pad(sphere_xyz, ((0, 0), (0, n_pad - n)))
        offsets = jnp.pad(offsets, ((0, 0), (0, n_pad - n)))

    kernel = make_onion_kernel(ratio, num_layers)

    out = pl.pallas_call(
        kernel,
        out_shape=jax.ShapeDtypeStruct((3, n_pad), jnp.float32),
        grid_spec=pl.GridSpec(
            grid=(n_pad // tile,),
            in_specs=[
                # radii: whole (3,) array in SMEM, read as scalars.
                pl.BlockSpec(memory_space=pltpu.MemorySpace.SMEM),
                pl.BlockSpec((3, tile), lambda i: (0, i)),
                pl.BlockSpec((num_layers, tile), lambda i: (0, i)),
            ],
            out_specs=pl.BlockSpec((3, tile), lambda i: (0, i)),
        ),
        compiler_params=pltpu.CompilerParams(
            dimension_semantics=("parallel",)
        ),
    )(radii.astype(jnp.float32), sphere_xyz, offsets)

    return out[:, :n]


def _unit_uv_sphere(nu: int, nv: int):
    """Host-side glue: unit UV-sphere points (3, nu*nv) and triangle faces."""
    theta = (np.arange(nu) + 0.5) / nu * np.pi
    phi = np.arange(nv) / nv * 2.0 * np.pi
    th, ph = np.meshgrid(theta, phi, indexing="ij")
    x = np.sin(th) * np.cos(ph)
    y = np.sin(th) * np.sin(ph)
    z = np.cos(th)
    pts = np.stack([x.ravel(), y.ravel(), z.ravel()], axis=0).astype(np.float32)

    faces = []
    for i in range(nu - 1):
        for j in range(nv):
            a = i * nv + j
            b = i * nv + (j + 1) % nv
            c = (i + 1) * nv + j
            d = (i + 1) * nv + (j + 1) % nv
            faces.append([a, b, c])
            faces.append([b, d, c])
    return pts, np.asarray(faces, dtype=np.int32)


def _reference(sphere_xyz, radii, offsets, ratio=RATIO):
    """Pure-JAX reference of the same math (for a correctness check)."""
    xyz = sphere_xyz * radii.reshape(3, 1)
    for l in range(offsets.shape[0]):
        nrm2 = jnp.sum(xyz * xyz, axis=0, keepdims=True)
        inv = lax.rsqrt(nrm2 + EPS)
        xyz = xyz * (1.0 + ratio * offsets[l][None, :] * inv)
    return xyz


if __name__ == "__main__":
    key = jax.random.PRNGKey(0)

    # Small shapes: ns = [256, 256, 256] -> 256-vertex core, 2 onion layers.
    ns = [256, 256, 256]
    nu, nv = 16, 16  # nu * nv == ns[0]
    sphere_np, faces_np = _unit_uv_sphere(nu, nv)
    sphere = jnp.asarray(sphere_np)                                    # (3, 256)
    faces = jnp.asarray(faces_np)                                      # (F, 3) int32

    radii = jnp.array([0.5, 0.5, 0.5], dtype=jnp.float32)              # nn.Parameter([0.5]*3)
    num_layers = len(ns) - 1
    offsets = 0.01 * jax.random.normal(key, (num_layers, ns[0]), dtype=jnp.float32)

    bxyz = onion_forward(sphere, radii, offsets, ratio=RATIO)          # (3, N)
    vertices = jnp.transpose(bxyz)                                     # to_vertices -> (N, 3)

    jax.block_until_ready(vertices)
    jax.block_until_ready(faces)

    # Correctness vs pure-JAX reference of the same formulation.
    ref = jnp.transpose(_reference(sphere, radii, offsets, ratio=RATIO))
    np.testing.assert_allclose(np.asarray(vertices), np.asarray(ref),
                               rtol=1e-4, atol=1e-5)

    assert vertices.shape == (ns[0], 3) and vertices.dtype == jnp.float32
    assert bool(jnp.all(jnp.isfinite(vertices)))
    print("KERNEL_OK")
</pallas_src>

<mosaic_0001>
module attributes {stable_mosaic.version = 11 : i64} {
  func.func @kernel(%arg0: i32, %arg1: memref<3xf32, #tpu.memory_space<smem>>, %arg2: memref<3x256xf32, #tpu.memory_space<vmem>>, %arg3: memref<2x256xf32, #tpu.memory_space<vmem>>, %arg4: memref<3x256xf32, #tpu.memory_space<vmem>>) attributes {dimension_semantics = [#tpu.dimension_semantics<parallel>], iteration_bounds = array<i64: 1>, scalar_prefetch = 0 : i64, scratch_operands = 0 : i64, tpu.core_type = #tpu.core_type<tc>, window_params = [{transform_indices = @transform_0, window_bounds = array<i64: 3>}, {transform_indices = @transform_1, window_bounds = array<i64: 3, 256>}, {transform_indices = @transform_2, window_bounds = array<i64: 2, 256>}, {transform_indices = @transform_3, window_bounds = array<i64: 3, 256>}]} {
    %c0 = arith.constant 0 : index
    %c0_0 = arith.constant 0 : index
    %0 = vector.load %arg2[%c0, %c0_0] : memref<3x256xf32, #tpu.memory_space<vmem>>, vector<1x256xf32>
    %c0_1 = arith.constant 0 : index
    %1 = memref.load %arg1[%c0_1] : memref<3xf32, #tpu.memory_space<smem>>
    %2 = vector.broadcast %1 : f32 to vector<1x256xf32>
    %3 = arith.mulf %0, %2 : vector<1x256xf32>
    %c1 = arith.constant 1 : index
    %c0_2 = arith.constant 0 : index
    %4 = vector.load %arg2[%c1, %c0_2] : memref<3x256xf32, #tpu.memory_space<vmem>>, vector<1x256xf32>
    %c1_3 = arith.constant 1 : index
    %5 = memref.load %arg1[%c1_3] : memref<3xf32, #tpu.memory_space<smem>>
    %6 = vector.broadcast %5 : f32 to vector<1x256xf32>
    %7 = arith.mulf %4, %6 : vector<1x256xf32>
    %c2 = arith.constant 2 : index
    %c0_4 = arith.constant 0 : index
    %8 = vector.load %arg2[%c2, %c0_4] : memref<3x256xf32, #tpu.memory_space<vmem>>, vector<1x256xf32>
    %c2_5 = arith.constant 2 : index
    %9 = memref.load %arg1[%c2_5] : memref<3xf32, #tpu.memory_space<smem>>
    %10 = vector.broadcast %9 : f32 to vector<1x256xf32>
    %11 = arith.mulf %8, %10 : vector<1x256xf32>
    %12 = arith.mulf %3, %3 : vector<1x256xf32>
    %13 = arith.mulf %7, %7 : vector<1x256xf32>
    %14 = arith.addf %12, %13 : vector<1x256xf32>
    %15 = arith.mulf %11, %11 : vector<1x256xf32>
    %16 = arith.addf %14, %15 : vector<1x256xf32>
    %cst = arith.constant 9.99999996E-13 : f32
    %17 = vector.broadcast %cst : f32 to vector<1x256xf32>
    %18 = arith.addf %16, %17 : vector<1x256xf32>
    %19 = math.rsqrt %18 : vector<1x256xf32>
    %c0_6 = arith.constant 0 : index
    %c0_7 = arith.constant 0 : index
    %20 = vector.load %arg3[%c0_6, %c0_7] : memref<2x256xf32, #tpu.memory_space<vmem>>, vector<1x256xf32>
    %cst_8 = arith.constant 1.250000e-02 : f32
    %21 = vector.broadcast %cst_8 : f32 to vector<1x256xf32>
    %22 = arith.mulf %21, %20 : vector<1x256xf32>
    %23 = arith.mulf %22, %19 : vector<1x256xf32>
    %cst_9 = arith.constant 1.000000e+00 : f32
    %24 = vector.broadcast %cst_9 : f32 to vector<1x256xf32>
    %25 = arith.addf %24, %23 : vector<1x256xf32>
    %26 = arith.mulf %3, %25 : vector<1x256xf32>
    %27 = arith.mulf %7, %25 : vector<1x256xf32>
    %28 = arith.mulf %11, %25 : vector<1x256xf32>
    %29 = arith.mulf %26, %26 : vector<1x256xf32>
    %30 = arith.mulf %27, %27 : vector<1x256xf32>
    %31 = arith.addf %29, %30 : vector<1x256xf32>
    %32 = arith.mulf %28, %28 : vector<1x256xf32>
    %33 = arith.addf %31, %32 : vector<1x256xf32>
    %cst_10 = arith.constant 9.99999996E-13 : f32
    %34 = vector.broadcast %cst_10 : f32 to vector<1x256xf32>
    %35 = arith.addf %33, %34 : vector<1x256xf32>
    %36 = math.rsqrt %35 : vector<1x256xf32>
    %c1_11 = arith.constant 1 : index
    %c0_12 = arith.constant 0 : index
    %37 = vector.load %arg3[%c1_11, %c0_12] : memref<2x256xf32, #tpu.memory_space<vmem>>, vector<1x256xf32>
    %cst_13 = arith.constant 1.250000e-02 : f32
    %38 = vector.broadcast %cst_13 : f32 to vector<1x256xf32>
    %39 = arith.mulf %38, %37 : vector<1x256xf32>
    %40 = arith.mulf %39, %36 : vector<1x256xf32>
    %cst_14 = arith.constant 1.000000e+00 : f32
    %41 = vector.broadcast %cst_14 : f32 to vector<1x256xf32>
    %42 = arith.addf %41, %40 : vector<1x256xf32>
    %43 = arith.mulf %26, %42 : vector<1x256xf32>
    %44 = arith.mulf %27, %42 : vector<1x256xf32>
    %45 = arith.mulf %28, %42 : vector<1x256xf32>
    %c0_15 = arith.constant 0 : index
    %c0_16 = arith.constant 0 : index
    %46 = vector.load %arg4[%c0_15, %c0_16] : memref<3x256xf32, #tpu.memory_space<vmem>>, vector<1x256xf32>
    tpu.vector_store %arg4[%c0_15, %c0_16], %43 {strides = array<i32>} : memref<3x256xf32, #tpu.memory_space<vmem>>, vector<1x256xf32>,
    %c1_17 = arith.constant 1 : index
    %c0_18 = arith.constant 0 : index
    %47 = vector.load %arg4[%c1_17, %c0_18] : memref<3x256xf32, #tpu.memory_space<vmem>>, vector<1x256xf32>
    tpu.vector_store %arg4[%c1_17, %c0_18], %44 {strides = array<i32>} : memref<3x256xf32, #tpu.memory_space<vmem>>, vector<1x256xf32>,
    %c2_19 = arith.constant 2 : index
    %c0_20 = arith.constant 0 : index
    %48 = vector.load %arg4[%c2_19, %c0_20] : memref<3x256xf32, #tpu.memory_space<vmem>>, vector<1x256xf32>
    tpu.vector_store %arg4[%c2_19, %c0_20], %45 {strides = array<i32>} : memref<3x256xf32, #tpu.memory_space<vmem>>, vector<1x256xf32>,
    return
  }
  func.func @transform_0(%arg0: i32) -> i32 {
    %c0_i32 = arith.constant 0 : i32
    %c0_i32_0 = arith.constant 0 : i32
    return %c0_i32 : i32
  }
  func.func @transform_1(%arg0: i32) -> (i32, i32) {
    %c0_i32 = arith.constant 0 : i32
    %c0_i32_0 = arith.constant 0 : i32
    return %c0_i32, %arg0 : i32, i32
  }
  func.func @transform_2(%arg0: i32) -> (i32, i32) {
    %c0_i32 = arith.constant 0 : i32
    %c0_i32_0 = arith.constant 0 : i32
    return %c0_i32, %arg0 : i32, i32
  }
  func.func @transform_3(%arg0: i32) -> (i32, i32) {
    %c0_i32 = arith.constant 0 : i32
    %c0_i32_0 = arith.constant 0 : i32
    return %c0_i32, %arg0 : i32, i32
  }
}

</mosaic_0001>

<bundles_post_ra>
// kernel: tpu_custom_call.1
= control target key start
LH: loop header
LB: loop body
LE: loop exit
PB: predicated region body
PF: predicated region fallthrough
CT: control target
= control target key end

     0   :  { %8 = vsyncpa [#allocation5], 0  ;;  %s241_s0 = inlined_call_operand.hbm [shape: f32[3], index: 0, kind: input, shape index: {}]   ;;  %s242_s1 = inlined_call_operand.hbm [shape: f32[3,256], index: 1, kind: input, shape index: {}]   ;;  %s243_s2 = inlined_call_operand.vmem [shape: f32[2,256], index: 2, kind: input, shape index: {}]   ;;  %s244_s3 = inlined_call_operand.hbm [shape: f32[3,256], index: 3, kind: output, shape index: {}]  }
   0x1   :  { %9 = vsyncpa [#allocation3], 0 }
   0x2   :  { %10 = vsyncpa [#allocation4], 0  ;;  %s116_s14 = scalar_lea.hbm %s241_s0, 16 }
   0x3   :  { %p117_p0 = scmp.ne.s32.totalorder %s241_s0, %s116_s14  ;;  %p120_p1 = scmp.lt.u32.totalorder %s116_s14, %s241_s0 }
   0x5   :  { %p122_p2 = pnand %p120_p1, %p117_p0 }
   0x7   :  { %125 = shalt.err (!%p122_p2)
}
   0x8   :  { %s176_s19 = smov [#allocation2]   ;;  %s177_s22 = smov [#allocation6]  }
   0x9   :  { %18 = dma.hbm_to_smem %s241_s0, 16, %s176_s19, [#allocation5]  }
   0xa   :  { %s25_s23 = sshll.u32 %s177_s22, 4  ;;  %s126_s26 = scalar_lea.hbm %s242_s1, 128  ;;  %s26_s23 = int_to_ptr.vmem [resolvable:$true] %s25_s23 }
   0xb   :  { %p127_p3 = scmp.ne.s32.totalorder %s242_s1, %s126_s26  ;;  %p130_p4 = scmp.lt.u32.totalorder %s126_s26, %s242_s1 }
   0xd   :  { %p132_p5 = pnand %p130_p4, %p127_p3 }
   0xf   :  { %135 = shalt.err (!%p132_p5)
}
  0x10   :  { %s136_s4 = scalar_lea.vmem %s26_s23, 128  ;;  %p141_p7 = scmp.lt.s32.totalorder %s26_s23, %s26_s23 }
  0x11   :  { %p137_p6 = scmp.ne.s32.totalorder %s26_s23, %s136_s4  ;;  %p142_p8 = scmp.lt.s32.totalorder %s136_s4, %s136_s4 }
  0x13   :  { %p143_p9 = por %p142_p8, %p141_p7 }
  0x15   :  { %p144_p10 = pnand %p143_p9, %p137_p6 }
  0x17   :  { %147 = shalt.err (!%p144_p10)
}
  0x18   :  { %28 = dma.hbm_to_vmem [thread:$0]  %s242_s1, 128, %s26_s23, [#allocation3]  }
  0x19   :  { %170 = dma.done.wait [#allocation5], 16  }
  0x1a   :  { %171 = vsyncadd [#allocation5], 4294967280 }
  0x1b   :  { %172 = dma.done.wait [#allocation3], 128  }
  0x1c   :  { %173 = vsyncadd [#allocation3], 4294967168 }
  0x1d   :  { %37 = sfence }
  0x1e   :  { %s39_s6 = sld [smem:[#allocation2]]  ;;  %s106_s7 = sld [smem:[#allocation2 + $0x1]]  ;;  %v38_v0 = vld [vmem:[#allocation6] ss:$4 sm:$0x3]  ;;  %v81_v32 = vlaneseq }
  0x1f   :  { %s107_s8 = sld [smem:[#allocation2 + $0x2]]  ;;  %v43_v1 = vld [vmem:[#allocation6 + $0x1] ss:$4 sm:$0x3]  ;;  %s178_s12 = smov [#allocation7]  }
  0x20   :  { %v48_v3 = vld [vmem:[#allocation6 + $0x2] ss:$4 sm:$0x3]  ;;  %v59_v15 = vld [vmem:[%s243_s2] ss:$2 sm:$0x3] }
  0x21   :  { %v60_v16 = vmul.f32 0.0125, %v59_v15  ;;  %v108_v29 = vld [vmem:[%s243_s2 + $0x1] ss:$2 sm:$0x3]  ;;  %s96_s13 = sshll.u32 %s178_s12, 4  ;;  %s97_s13 = int_to_ptr.vmem [resolvable:$true] %s96_s13 }
  0x22   :  { %v75_v30 = vmul.f32 0.0125, %v108_v29  ;;  %vm83_vm0 = vcmp.lt.s32.totalorder %v81_v32, 256  ;;  %s148_s14 = scalar_lea.vmem %s97_s13, 128  ;;  %p153_p12 = scmp.lt.s32.totalorder %s97_s13, %s97_s13 }
  0x23   :  { %p149_p11 = scmp.ne.s32.totalorder %s97_s13, %s148_s14  ;;  %p154_p13 = scmp.lt.s32.totalorder %s148_s14, %s148_s14 }
  0x24   :  { %v40_v2 = vstv %s39_s6  ;;  %v45_v5 = vstv %s106_s7 }
  0x25   :  { %v41_v4 = vmul.f32 %v40_v2, %v38_v0  ;;  %v46_v6 = vmul.f32 %v45_v5, %v43_v1  ;;  %v50_v7 = vstv %s107_s8  ;;  %p155_p0 = por %p154_p13, %p153_p12 }
  0x26   :  { %v51_v8 = vmul.f32 %v50_v7, %v48_v3 }
  0x27   :  { %v52_v9 = vmul.f32 %v41_v4, %v41_v4  ;;  %v53_v10 = vmul.f32 %v46_v6, %v46_v6  ;;  %p156_p1 = pnand %p155_p0, %p149_p11 }
  0x28   :  { %v55_v11 = vmul.f32 %v51_v8, %v51_v8 }
  0x29   :  { %v54_v12 = vadd.f32 %v53_v10, %v52_v9 }
  0x2b   :  { %v56_v13 = vadd.f32 %v55_v11, %v54_v12 }
  0x2d   :  { %v57_v14 = vadd.f32 1e-12, %v56_v13 }
  0x2f   :  { %112 = vrsqrt.f32 %v57_v14 }
  0x39   :  { %v113_v17 = vpop.eup %112 }
  0x3a   :  { %v61_v18 = vmul.f32 %v113_v17, %v60_v16 }
  0x3c   :  { %v62_v19 = vadd.f32 1.0, %v61_v18 }
  0x3e   :  { %v63_v20 = vmul.f32 %v62_v19, %v41_v4  ;;  %v64_v21 = vmul.f32 %v62_v19, %v46_v6  ;;  %v65_v22 = vmul.f32 %v62_v19, %v51_v8 }
  0x40   :  { %v66_v23 = vmul.f32 %v63_v20, %v63_v20  ;;  %v67_v24 = vmul.f32 %v64_v21, %v64_v21  ;;  %v69_v25 = vmul.f32 %v65_v22, %v65_v22 }
  0x42   :  { %v68_v26 = vadd.f32 %v67_v24, %v66_v23 }
  0x44   :  { %v70_v27 = vadd.f32 %v69_v25, %v68_v26 }
  0x46   :  { %v71_v28 = vadd.f32 1e-12, %v70_v27 }
  0x48   :  { %114 = vrsqrt.f32 %v71_v28 }
  0x52   :  { %v115_v31 = vpop.eup %114 }
  0x53   :  { %v76_v33 = vmul.f32 %v115_v31, %v75_v30 }
  0x55   :  { %v77_v34 = vadd.f32 1.0, %v76_v33 }
  0x57   :  { %v78_v35 = vmul.f32 %v77_v34, %v63_v20  ;;  %v79_v36 = vmul.f32 %v77_v34, %v64_v21  ;;  %v80_v37 = vmul.f32 %v77_v34, %v65_v22 }
  0x59   :  { %85 = vst.msk [vmem:[#allocation7] ss:$4 sm:$0x3] %vm83_vm0, %v78_v35  ;;  %87 = vst.msk [vmem:[#allocation7 + $0x1] ss:$4 sm:$0x3] %vm83_vm0, %v79_v36 }
  0x5a   :  { %89 = vst.msk [vmem:[#allocation7 + $0x2] ss:$4 sm:$0x3] %vm83_vm0, %v80_v37 }
  0x5b   :  { %159 = shalt.err (!%p156_p1)
}
  0x5c   :  { %s160_s16 = scalar_lea.hbm %s244_s3, 128 }
  0x5d   :  { %p161_p2 = scmp.ne.s32.totalorder %s244_s3, %s160_s16  ;;  %p164_p3 = scmp.lt.u32.totalorder %s160_s16, %s244_s3 }
  0x5f   :  { %p166_p4 = pnand %p164_p3, %p161_p2 }
  0x61   :  { %169 = shalt.err (!%p166_p4)
}
  0x62   :  { %99 = dma.vmem_to_hbm [thread:$0]  %s97_s13, 128, %s244_s3, [#allocation4]  }
  0x63   :  { %174 = dma.done.wait [#allocation4], 128  }
  0x64   :  { %175 = vsyncadd [#allocation4], 4294967168 }
  0x65   :  { %103 = vsyncpa [#allocation3], 1 }
  0x66   :  { %104 = vsyncpa [#allocation4], 1 }
  0x67   :  { %105 = vsyncpa [#allocation5], 1 }

</bundles_post_ra>
